<compile_context>
chip_gen: v6e
topology: v6e:2x2x1
jax: 0.10.0
libtpu: 0.0.40
codegen_flags: <defaults>
</compile_context>

<pallas_src>
import functools

import jax
import jax.numpy as jnp
from jax import lax
from jax.experimental import pallas as pl
from jax.experimental.pallas import tpu as pltpu


def _round_up(v, m):
    return ((v + m - 1) // m) * m


def _cdiv(a, b):
    return (a + b - 1) // b


# ---------------------------------------------------------------------------
# Kernels
# ---------------------------------------------------------------------------

def _linear_small_kernel(x_ref, w_ref, b_ref, o_ref):
    """Whole problem in one shot (grid=()): y = x @ W^T + b."""
    o_ref[...] = (
        lax.dot_general(
            x_ref[...],
            w_ref[...],
            dimension_numbers=(((1,), (1,)), ((), ())),
            preferred_element_type=jnp.float32,
        )
        + b_ref[...]
    ).astype(o_ref.dtype)


def _linear_tiled_kernel(x_ref, w_ref, b_ref, o_ref):
    """One (tm, tn) output tile; K is the innermost ('arbitrary') grid axis.

    x_ref: (tm, tk)   input rows
    w_ref: (tn, tk)   weight block, PyTorch [N, K] layout (no transpose needed)
    b_ref: (1,  tn)   bias row
    o_ref: (tm, tn)   f32 output tile, VMEM-resident across the K axis

    The output block index ignores k, so o_ref stays resident for the whole
    reduction: initialize it with the bias at k == 0, then accumulate the
    partial products directly into it (no separate scratch, no epilogue copy).
    Output dtype is f32 here, so accumulating in-place is exact.
    """
    k = pl.program_id(2)

    @pl.when(k == 0)
    def _():
        o_ref[...] = jnp.broadcast_to(b_ref[...], o_ref.shape)

    o_ref[...] += lax.dot_general(
        x_ref[...],
        w_ref[...],
        dimension_numbers=(((1,), (1,)), ((), ())),
        preferred_element_type=jnp.float32,
    )


# ---------------------------------------------------------------------------
# Wrapper
# ---------------------------------------------------------------------------

@functools.partial(jax.jit, static_argnames=("tm_cap", "tn_cap", "tk_cap"))
def evolutionary_search_layer(x, weight, bias, *, tm_cap=512, tn_cap=512,
                              tk_cap=1024):
    """y = x @ weight.T + bias.

    x:      [M, K] float32
    weight: [N, K] float32 (PyTorch nn.Linear layout, consumed as-is)
    bias:   [N]    float32
    """
    M, K = x.shape
    N, Kw = weight.shape
    assert K == Kw, "weight inner dim must match x"

    b2d = bias.reshape(1, N)

    # ---- Fast path: whole problem fits one VMEM tile -> grid=(), no padding,
    # no slicing, single fused dot + bias.  Full-dim blocks are exempt from
    # the (8,128) divisibility rule.
    small_bytes = 4 * (M * K + N * K + M * N + N)
    if M <= tm_cap and N <= tn_cap and K <= tk_cap and small_bytes <= (8 << 20):
        return pl.pallas_call(
            _linear_small_kernel,
            out_shape=jax.ShapeDtypeStruct((M, N), x.dtype),
        )(x, weight, b2d)

    # ---- Tiled path: balanced tiles so padding stays near zero.
    num_m = _cdiv(M, tm_cap)
    num_n = _cdiv(N, tn_cap)
    num_k = _cdiv(K, tk_cap)

    # v7x megacore: ensure >=2 parallel (i, j) tiles when possible so both
    # TensorCores get work (harmless on single-TC v5e/v6e).
    if num_m * num_n < 2:
        if M >= 16:
            num_m = 2
        elif N >= 256:
            num_n = 2

    tm = _round_up(_cdiv(M, num_m), 8)
    tn = _round_up(_cdiv(N, num_n), 128)
    tk = _round_up(_cdiv(K, num_k), 128)

    M_pad = tm * num_m
    N_pad = tn * num_n
    K_pad = tk * num_k

    # Zero-padding is exact for the matmul; padded columns are sliced off.
    # With balanced tiling the padded fraction is small.
    x_p = x
    if (M_pad, K_pad) != (M, K):
        x_p = jnp.pad(x, ((0, M_pad - M), (0, K_pad - K)))
    w_p = weight
    if (N_pad, K_pad) != (N, K):
        w_p = jnp.pad(weight, ((0, N_pad - N), (0, K_pad - K)))
    b_p = b2d
    if N_pad != N:
        b_p = jnp.pad(b2d, ((0, 0), (0, N_pad - N)))

    grid = (num_m, num_n, num_k)

    cost = pl.CostEstimate(
        flops=2 * M_pad * N_pad * K_pad,
        transcendentals=0,
        bytes_accessed=4 * (M_pad * K_pad * num_n + N_pad * K_pad * num_m
                            + M_pad * N_pad + N_pad),
    )

    # Working set: double-buffered x/W/bias tiles + double-buffered output.
    vmem_bytes = 4 * (2 * (tm * tk + tn * tk + tn) + 2 * tm * tn)
    vmem_limit = max(16 * 1024 * 1024,
                     min(int(1.5 * vmem_bytes), 30 * 1024 * 1024))

    out_p = pl.pallas_call(
        _linear_tiled_kernel,
        out_shape=jax.ShapeDtypeStruct((M_pad, N_pad), jnp.float32),
        grid_spec=pltpu.PrefetchScalarGridSpec(
            num_scalar_prefetch=0,
            grid=grid,
            in_specs=[
                pl.BlockSpec((tm, tk), lambda i, j, k: (i, k)),   # x tile
                pl.BlockSpec((tn, tk), lambda i, j, k: (j, k)),   # W tile [N,K]
                pl.BlockSpec((1, tn), lambda i, j, k: (0, j)),    # bias row
            ],
            out_specs=pl.BlockSpec((tm, tn), lambda i, j, k: (i, j)),
        ),
        compiler_params=pltpu.CompilerParams(
            dimension_semantics=("parallel", "parallel", "arbitrary"),
            vmem_limit_bytes=vmem_limit,
        ),
        cost_estimate=cost,
    )(x_p, w_p, b_p)

    out_p = out_p.astype(x.dtype)
    if (M_pad, N_pad) != (M, N):
        out_p = out_p[:M, :N]
    return out_p


if __name__ == "__main__":
    # Nominal shapes consistent with the module: batch=8, in=32, out=16.
    batch = 8
    input_channels = 32
    output_channels = 16

    key = jax.random.PRNGKey(0)
    kx, kw, kb = jax.random.split(key, 3)

    x = jax.random.normal(kx, (batch, input_channels), dtype=jnp.float32)
    # Mimic nn.Linear uniform(-1/sqrt(K), 1/sqrt(K)) init, deterministically.
    bound = 1.0 / (input_channels ** 0.5)
    weight = jax.random.uniform(kw, (output_channels, input_channels),
                                minval=-bound, maxval=bound, dtype=jnp.float32)
    bias = jax.random.uniform(kb, (output_channels,),
                              minval=-bound, maxval=bound, dtype=jnp.float32)

    y = evolutionary_search_layer(x, weight, bias)
    jax.block_until_ready(y)

    y_ref = x @ weight.T + bias
    assert y.shape == (batch, output_channels)
    assert jnp.allclose(y, y_ref, atol=1e-5, rtol=1e-5), "mismatch vs reference"

    # Ragged small shape -> still the no-grid fast path (no padding at all).
    M2, K2, N2 = 300, 200, 150
    k1, k2, k3 = jax.random.split(jax.random.PRNGKey(1), 3)
    x2 = jax.random.normal(k1, (M2, K2), dtype=jnp.float32)
    w2 = jax.random.normal(k2, (N2, K2), dtype=jnp.float32) * 0.05
    b2 = jax.random.normal(k3, (N2,), dtype=jnp.float32)
    y2 = evolutionary_search_layer(x2, w2, b2)
    jax.block_until_ready(y2)
    y2_ref = x2 @ w2.T + b2
    assert jnp.allclose(y2, y2_ref, atol=1e-4, rtol=1e-4), "fast-path mismatch"

    # Larger ragged shape -> exercises the balanced tiled path
    # (grid = (3, 2, 2); tm=400, tn=384, tk=768; only N is padded).
    M3, K3, N3 = 1200, 1536, 640
    k4, k5, k6 = jax.random.split(jax.random.PRNGKey(2), 3)
    x3 = jax.random.normal(k4, (M3, K3), dtype=jnp.float32)
    w3 = jax.random.normal(k5, (N3, K3), dtype=jnp.float32) * 0.02
    b3 = jax.random.normal(k6, (N3,), dtype=jnp.float32)
    y3 = evolutionary_search_layer(x3, w3, b3)
    jax.block_until_ready(y3)
    y3_ref = jnp.einsum("mk,nk->mn", x3, w3,
                        precision=lax.Precision.HIGHEST) + b3
    assert jnp.allclose(y3, y3_ref, atol=1e-3, rtol=1e-3), "tiled-path mismatch"

    print("KERNEL_OK")
</pallas_src>

<mosaic_0001>
module attributes {stable_mosaic.version = 11 : i64} {
  func.func @_linear_small_kernel(%arg0: memref<8x32xf32, #tpu.memory_space<vmem>>, %arg1: memref<16x32xf32, #tpu.memory_space<vmem>>, %arg2: memref<1x16xf32, #tpu.memory_space<vmem>>, %arg3: memref<8x16xf32, #tpu.memory_space<vmem>>) attributes {dimension_semantics = [], scalar_prefetch = 0 : i64, scratch_operands = 0 : i64, tpu.core_type = #tpu.core_type<tc>} {
    %c0 = arith.constant 0 : index
    %c0_0 = arith.constant 0 : index
    %0 = vector.load %arg0[%c0, %c0_0] : memref<8x32xf32, #tpu.memory_space<vmem>>, vector<8x32xf32>
    %c0_1 = arith.constant 0 : index
    %c0_2 = arith.constant 0 : index
    %1 = vector.load %arg1[%c0_1, %c0_2] : memref<16x32xf32, #tpu.memory_space<vmem>>, vector<16x32xf32>
    %cst = arith.constant dense<0.000000e+00> : vector<8x16xf32>
    %2 = tpu.matmul %0, %1, %cst {dimension_numbers = #tpu.dot_dimension_numbers<[1], [1], [0], [0], [0, 0, 1, 0], [], []>} : vector<8x32xf32>, vector<16x32xf32>, vector<8x16xf32> -> vector<8x16xf32>
    %c0_3 = arith.constant 0 : index
    %c0_4 = arith.constant 0 : index
    %3 = vector.load %arg2[%c0_3, %c0_4] : memref<1x16xf32, #tpu.memory_space<vmem>>, vector<1x16xf32>
    %4 = vector.broadcast %3 : vector<1x16xf32> to vector<8x16xf32>
    %5 = arith.addf %2, %4 : vector<8x16xf32>
    %c0_5 = arith.constant 0 : index
    %c0_6 = arith.constant 0 : index
    %6 = vector.load %arg3[%c0_5, %c0_6] : memref<8x16xf32, #tpu.memory_space<vmem>>, vector<8x16xf32>
    tpu.vector_store %arg3[%c0_5, %c0_6], %5 {strides = array<i32>} : memref<8x16xf32, #tpu.memory_space<vmem>>, vector<8x16xf32>,
    return
  }
}

</mosaic_0001>

<bundles_post_ra>
// kernel: evolutionary_search_layer.1
= control target key start
LH: loop header
LB: loop body
LE: loop exit
PB: predicated region body
PF: predicated region fallthrough
CT: control target
= control target key end

     0   :  { %8 = vsyncpa [#allocation3], 0  ;;  %s275_s0 = inlined_call_operand.hbm [shape: f32[8,32], index: 0, kind: input, shape index: {}]   ;;  %s276_s1 = inlined_call_operand.hbm [shape: f32[16,32], index: 1, kind: input, shape index: {}]   ;;  %s277_s2 = inlined_call_operand.vmem [shape: f32[1,16], index: 2, kind: input, shape index: {}]   ;;  %s278_s3 = inlined_call_operand.hbm [shape: f32[8,16], index: 3, kind: output, shape index: {}]  }
   0x1   :  { %9 = vsyncpa [#allocation6], 0 }
   0x2   :  { %10 = vsyncpa [#allocation4], 0  ;;  %s236_s12 = smov [#allocation2]   ;;  %s237_s14 = smov [#allocation5]  }
   0x3   :  { %s17_s13 = sshll.u32 %s236_s12, 4  ;;  %s26_s15 = sshll.u32 %s237_s14, 4  ;;  %s18_s13 = int_to_ptr.vmem [resolvable:$true] %s17_s13  ;;  %s27_s15 = int_to_ptr.vmem [resolvable:$true] %s26_s15 }
   0x4   :  { %s178_s16 = scalar_lea.vmem %s18_s13, 128  ;;  %p183_p1 = scmp.lt.s32.totalorder %s18_s13, %s18_s13 }
   0x5   :  { %p179_p0 = scmp.ne.s32.totalorder %s18_s13, %s178_s16  ;;  %p184_p2 = scmp.lt.s32.totalorder %s178_s16, %s178_s16 }
   0x7   :  { %p185_p3 = por %p184_p2, %p183_p1 }
   0x9   :  { %p186_p4 = pnand %p185_p3, %p179_p0 }
   0xb   :  { %189 = shalt.err (!%p186_p4)
}
   0xc   :  { %20 = dma.hbm_to_vmem [thread:$0]  %s275_s0, 128, %s18_s13, [#allocation3]  }
   0xd   :  { %s198_s19 = scalar_lea.vmem %s27_s15, 256  ;;  %p203_p6 = scmp.lt.s32.totalorder %s27_s15, %s27_s15 }
   0xe   :  { %p199_p5 = scmp.ne.s32.totalorder %s27_s15, %s198_s19  ;;  %p204_p7 = scmp.lt.s32.totalorder %s198_s19, %s198_s19 }
  0x10   :  { %p205_p8 = por %p204_p7, %p203_p6 }
  0x12   :  { %p206_p9 = pnand %p205_p8, %p199_p5 }
  0x14   :  { %209 = shalt.err (!%p206_p9)
}
  0x15   :  { %s238_s20 = smov 128   ;;  %s239_s21 = smov 8  }
  0x16   :  { %32 = dma.hbm_to_vmem [thread:$0]  %s276_s1, 256, %s27_s15, [#allocation6], %s238_s20, %s238_s20, %s239_s21  }
  0x17   :  { %230 = dma.done.wait [#allocation3], 128  }
  0x18   :  { %231 = vsyncadd [#allocation3], 4294967168 }
  0x19   :  { %232 = dma.done.wait [#allocation6], 256  }
  0x1a   :  { %233 = vsyncadd [#allocation6], 4294967040  ;;  %v240_v0 = vmov 0.0   ;;  %vm241_vm0 = vmmov 0   ;;  %vm51_vm1 = vcmask 261120   ;;  %v43_v1 = vld [vmem:[#allocation5 + $0x8] sm:$0xff] }
  0x1b   :  { %156 = vmatprep.subr.mxu0 %v240_v0  ;;  %160 = vmatprep.mubr.msk.f32.mxu0 %vm241_vm0, %v240_v0  ;;  %v42_v2 = vld [vmem:[#allocation5] sm:$0xff]  ;;  %v41_v3 = vld [vmem:[#allocation2] sm:$0xff]  ;;  %s242_s1 = smov [#allocation7]   ;;  %vm131_vm2 = vcmask 130048  }
  0x1c   :  { %157 = vmatpush3.xpose.msk.msra.mxu0 %vm51_vm1, %v43_v1  ;;  %v149_v4 = vld [vmem:[%s277_s2] ss:$0 sm:$0xff]  ;;  %s139_s25 = sshll.u32 %s242_s1, 4  ;;  %s140_s25 = int_to_ptr.vmem [resolvable:$true] %s139_s25 }
  0x1d   :  { %158 = vmatprep.subr.mxu0 %v240_v0  ;;  %s210_s26 = scalar_lea.vmem %s140_s25, 128  ;;  %p215_p11 = scmp.lt.s32.totalorder %s140_s25, %s140_s25 }
  0x1e   :  { %p211_p10 = scmp.ne.s32.totalorder %s140_s25, %s210_s26  ;;  %p216_p12 = scmp.lt.s32.totalorder %s210_s26, %s210_s26 }
  0x20   :  { %159 = vmatpush3.xpose.msk.msra.mxu0 %vm51_vm1, %v42_v2  ;;  %p217_p13 = por %p216_p12, %p215_p11 }
  0x22   :  { %p218_p0 = pnand %p217_p13, %p211_p10 }
  0x23   :  { %161 = vmatmul.mubr.msk.f32.vlgmr.msra.gmra.mxu0 %vm51_vm1, %v41_v3 }
  0xe3   :  { %v127_v5 = vpop.f32.mrf.mxu0 }
  0xe4   :  { %v128_v6 = vadd.f32 %v149_v4, %v127_v5 }
  0xe5   :  { %v162_v7 = vpop.f32.mrf.mxu0 }
  0xe6   :  { %132 = vst.msk [vmem:[#allocation7] sm:$0xff] %vm131_vm2, %v128_v6 }
  0xe7   :  { %221 = shalt.err (!%p218_p0)
}
  0xe8   :  { %142 = dma.vmem_to_hbm [thread:$0]  %s140_s25, 128, %s278_s3, [#allocation4]  }
  0xe9   :  { %234 = dma.done.wait [#allocation4], 128  }
  0xea   :  { %235 = vsyncadd [#allocation4], 4294967168 }
  0xeb   :  { %146 = vsyncpa [#allocation3], 1 }
  0xec   :  { %147 = vsyncpa [#allocation6], 1 }
  0xed   :  { %148 = vsyncpa [#allocation4], 1 }

</bundles_post_ra>
